<compile_context>
chip_gen: v6e
topology: v6e:2x2x1
jax: 0.10.0
libtpu: 0.0.40
codegen_flags: <defaults>
</compile_context>

<pallas_src>
import jax
import jax.numpy as jnp
from jax.experimental import pallas as pl
from jax.experimental.pallas import tpu as pltpu

BN_EPS = 1e-5
LANE = 128
VMEM_LIMIT = 32 * 1024 * 1024  # safe on v5e/v6e/v7x; >> per-step footprint


def _round_up(x, m):
    return (x + m - 1) // m * m


# ----------------------------- Pallas kernels ------------------------------

def matmul_stats_kernel(xcol_ref, w_ref, y_ref, stats_ref):
    """One M-tile of the conv matmul + per-tile BN partial statistics.

    xcol_ref: (TM, Kp)  bf16 im2col rows
    w_ref:    (Kp, Cp)  bf16 weights (lane-padded out channels), resident
    y_ref:    (TM, Cp)  f32 conv output tile
    stats_ref:(8,  Cp)  f32, row 0 = sum(y), row 1 = sum(y*y) over this tile
    """
    y = jnp.dot(xcol_ref[...], w_ref[...], preferred_element_type=jnp.float32)
    y_ref[...] = y
    stats_ref[...] = jnp.zeros(stats_ref.shape, stats_ref.dtype)
    stats_ref[0:1, :] = jnp.sum(y, axis=0, keepdims=True)
    stats_ref[1:2, :] = jnp.sum(y * y, axis=0, keepdims=True)


def bn_relu_kernel(y_ref, scale_ref, shift_ref, out_ref):
    """Tiled BN (precomputed scale/shift) + ReLU epilogue."""
    out_ref[...] = jnp.maximum(
        y_ref[...] * scale_ref[...] + shift_ref[...], 0.0)


def bn_relu_pool_kernel(y_ref, scale_ref, shift_ref, out_ref):
    """Fused BN + ReLU + 2x2 max-pool for the last conv of the block.

    y_ref:   (TB, 2, Wh, 2*Cp) f32 conv output; axis 1 = the two image rows of
             a pool window, last dim = the two image columns of a window
             concatenated along lanes (each Cp wide, lane-aligned split).
    out_ref: (TB, Wh, Cp)
    """
    cp = scale_ref.shape[-1]
    x = y_ref[...]
    s = scale_ref[...]
    t = shift_ref[...]
    a = jnp.maximum(x[..., :cp] * s + t, 0.0)      # (TB, 2, Wh, Cp)
    b = jnp.maximum(x[..., cp:] * s + t, 0.0)
    m = jnp.maximum(a, b)
    out_ref[...] = jnp.maximum(m[:, 0, :, :], m[:, 1, :, :])


# ------------------------------ JAX wrappers --------------------------------

def _im2col(x_nhwc, ksize, pad):
    """(N, H, W, C) -> (N*H*W, ksize*ksize*C), stride 1."""
    N, H, W, C = x_nhwc.shape
    xp = jnp.pad(x_nhwc, ((0, 0), (pad, pad), (pad, pad), (0, 0)))
    cols = []
    for dh in range(ksize):
        for dw in range(ksize):
            cols.append(xp[:, dh:dh + H, dw:dw + W, :])
    xcol = jnp.concatenate(cols, axis=-1)            # (N, H, W, k*k*C)
    return xcol.reshape(N * H * W, ksize * ksize * C)


def _conv_matmul_stats(x_nhwc, p, tm=256):
    """Pass 1: tiled im2col matmul + per-tile BN partial statistics."""
    w, ksize, pad = p["w"], p["ksize"], p["pad"]
    N, H, W, Cin = x_nhwc.shape
    Cout = w.shape[0]
    Cp = _round_up(Cout, LANE)

    xcol = _im2col(x_nhwc, ksize, pad)               # (M, K) f32
    M, K = xcol.shape
    Kp = _round_up(K, LANE)
    TM = min(tm, _round_up(M, 8))
    Mp = _round_up(M, TM)
    xcol = jnp.pad(xcol, ((0, Mp - M), (0, Kp - K))).astype(jnp.bfloat16)

    # PyTorch conv weight (Cout, Cin, kh, kw) -> (kh*kw*Cin, Cout) -> padded.
    wmat = jnp.transpose(w, (2, 3, 1, 0)).reshape(K, Cout)
    wmat = jnp.pad(wmat, ((0, Kp - K), (0, Cp - Cout))).astype(jnp.bfloat16)

    n_tiles = Mp // TM
    y, stats = pl.pallas_call(
        matmul_stats_kernel,
        grid=(n_tiles,),
        in_specs=[
            pl.BlockSpec((TM, Kp), lambda i: (i, 0)),
            pl.BlockSpec((Kp, Cp), lambda i: (0, 0)),   # resident weights
        ],
        out_specs=[
            pl.BlockSpec((TM, Cp), lambda i: (i, 0)),
            pl.BlockSpec((8, Cp), lambda i: (i, 0)),
        ],
        out_shape=(
            jax.ShapeDtypeStruct((Mp, Cp), jnp.float32),
            jax.ShapeDtypeStruct((n_tiles * 8, Cp), jnp.float32),
        ),
        compiler_params=pltpu.CompilerParams(
            dimension_semantics=("parallel",),
            vmem_limit_bytes=VMEM_LIMIT),
    )(xcol, wmat)

    # Padded xcol rows are all-zero (bias folded away), so they contribute
    # exactly zero to both partial sums -> divide by the true M.
    stats = stats.reshape(n_tiles, 8, Cp)
    sums = jnp.sum(stats[:, 0, :], axis=0)
    sumsq = jnp.sum(stats[:, 1, :], axis=0)
    mean = sums / M
    var = jnp.maximum(sumsq / M - mean * mean, 0.0)

    gamma_p = jnp.pad(p["gamma"], (0, Cp - Cout))
    beta_p = jnp.pad(p["beta"], (0, Cp - Cout))
    inv = jax.lax.rsqrt(var + BN_EPS)
    scale = (gamma_p * inv).reshape(1, Cp).astype(jnp.float32)
    shift = (beta_p - mean * gamma_p * inv).reshape(1, Cp).astype(jnp.float32)

    meta = (N, H, W, Cout, Cp, M, Mp, TM)
    return y, scale, shift, meta


def _bn_relu(y, scale, shift, meta):
    """Pass 2 (intermediate layers): tiled BN + ReLU."""
    N, H, W, Cout, Cp, M, Mp, TM = meta
    n_tiles = Mp // TM
    out = pl.pallas_call(
        bn_relu_kernel,
        grid=(n_tiles,),
        in_specs=[
            pl.BlockSpec((TM, Cp), lambda i: (i, 0)),
            pl.BlockSpec((1, Cp), lambda i: (0, 0)),
            pl.BlockSpec((1, Cp), lambda i: (0, 0)),
        ],
        out_specs=pl.BlockSpec((TM, Cp), lambda i: (i, 0)),
        out_shape=jax.ShapeDtypeStruct((Mp, Cp), jnp.float32),
        compiler_params=pltpu.CompilerParams(
            dimension_semantics=("parallel",),
            vmem_limit_bytes=VMEM_LIMIT),
    )(y, scale, shift)
    # Back to NHWC with the real channel count for the next layer's im2col.
    return out[:M].reshape(N, H, W, Cp)[..., :Cout]


def _bn_relu_pool(y, scale, shift, meta):
    """Pass 2 (last layer): tiled BN + ReLU fused with MaxPool2d(2, 2)."""
    N, H, W, Cout, Cp, M, Mp, TM = meta
    assert H % 2 == 0 and W % 2 == 0, "MaxPool2d(2,2) needs even H and W"
    Hh, Wh = H // 2, W // 2
    # (M, Cp) -> (N, H, W, Cp) -> (N*Hh, 2, Wh, 2*Cp): pure contiguous reshape.
    yr = y[:M].reshape(N * Hh, 2, Wh, 2 * Cp)
    rows = N * Hh
    row_bytes = 2 * Wh * 2 * Cp * 4
    tb = max(1, min(rows, (2 * 1024 * 1024) // row_bytes))
    while rows % tb:
        tb -= 1
    out = pl.pallas_call(
        bn_relu_pool_kernel,
        grid=(rows // tb,),
        in_specs=[
            pl.BlockSpec((tb, 2, Wh, 2 * Cp), lambda i: (i, 0, 0, 0)),
            pl.BlockSpec((1, Cp), lambda i: (0, 0)),
            pl.BlockSpec((1, Cp), lambda i: (0, 0)),
        ],
        out_specs=pl.BlockSpec((tb, Wh, Cp), lambda i: (i, 0, 0)),
        out_shape=jax.ShapeDtypeStruct((rows, Wh, Cp), jnp.float32),
        compiler_params=pltpu.CompilerParams(
            dimension_semantics=("parallel",),
            vmem_limit_bytes=VMEM_LIMIT),
    )(yr, scale, shift)
    return out.reshape(N, Hh, Wh, Cp)[..., :Cout]


def init_vgg_block_params(key, num_convs, in_channel, out_channel,
                          one_filter=False):
    """Mirror VGG_Block.__init__ layer construction (deterministic synthetic)."""
    layers = [(in_channel, out_channel, 3, 1)]
    for _ in range(num_convs - 1):
        layers.append((out_channel, out_channel, 3, 1))
    if one_filter:
        layers.pop()
        layers.append((out_channel, out_channel, 1, 0))

    params = []
    for (cin, cout, k, pad) in layers:
        key, kw_key, kb_key = jax.random.split(key, 3)
        fan_in = cin * k * k
        bound = 1.0 / jnp.sqrt(fan_in)
        params.append(dict(
            w=jax.random.uniform(kw_key, (cout, cin, k, k), jnp.float32,
                                 -bound, bound),
            b=jax.random.uniform(kb_key, (cout,), jnp.float32, -bound, bound),
            gamma=jnp.ones((cout,), jnp.float32),   # BatchNorm2d default init
            beta=jnp.zeros((cout,), jnp.float32),
            ksize=k, pad=pad,
        ))
    return params


def vgg_block_forward(x_nchw, params):
    # layout: NCHW -> NHWC for the kernels, back to NCHW at the end.
    x = jnp.transpose(x_nchw, (0, 2, 3, 1)).astype(jnp.float32)
    n_layers = len(params)
    for li, p in enumerate(params):
        y, scale, shift, meta = _conv_matmul_stats(x, p)
        if li < n_layers - 1:
            x = _bn_relu(y, scale, shift, meta)
        else:
            x = _bn_relu_pool(y, scale, shift, meta)   # pool fused here
    return jnp.transpose(x, (0, 3, 1, 2))


# ------------------------------ Reference (checking) ------------------------

def _reference_forward(x_nchw, params):
    x = x_nchw
    for p in params:
        # bf16 operands / f32 accumulation to match the MXU path.
        y = jax.lax.conv_general_dilated(
            x.astype(jnp.bfloat16), p["w"].astype(jnp.bfloat16),
            window_strides=(1, 1), padding=[(p["pad"], p["pad"])] * 2,
            dimension_numbers=("NCHW", "OIHW", "NCHW"),
            preferred_element_type=jnp.float32)
        y = y + p["b"][None, :, None, None]
        mean = jnp.mean(y, axis=(0, 2, 3), keepdims=True)
        var = jnp.var(y, axis=(0, 2, 3), keepdims=True)
        y = (y - mean) * jax.lax.rsqrt(var + BN_EPS)
        y = y * p["gamma"][None, :, None, None] + p["beta"][None, :, None, None]
        x = jnp.maximum(y, 0.0)
    x = jax.lax.reduce_window(x, -jnp.inf, jax.lax.max,
                              (1, 1, 2, 2), (1, 1, 2, 2), "VALID")
    return x


if __name__ == "__main__":
    key = jax.random.PRNGKey(0)
    key, xk = jax.random.split(key)

    # Small shapes consistent with the module: batch=2, Cin=4, 16x16 spatial.
    x = jax.random.normal(xk, (2, 4, 16, 16), jnp.float32)

    params = init_vgg_block_params(key, num_convs=2, in_channel=4,
                                   out_channel=8, one_filter=False)

    out = vgg_block_forward(x, params)
    out = jax.block_until_ready(out)

    ref = _reference_forward(x, params)
    assert out.shape == (2, 8, 8, 8), out.shape
    assert jnp.allclose(out, ref, rtol=1e-3, atol=1e-3), "mismatch vs reference"

    print("KERNEL_OK")
</pallas_src>

<mosaic_0001>
module attributes {stable_mosaic.version = 11 : i64} {
  func.func @matmul_stats_kernel(%arg0: i32, %arg1: memref<256x128xbf16, #tpu.memory_space<vmem>>, %arg2: memref<128x128xbf16, #tpu.memory_space<vmem>>, %arg3: memref<256x128xf32, #tpu.memory_space<vmem>>, %arg4: memref<8x128xf32, #tpu.memory_space<vmem>>) attributes {dimension_semantics = [#tpu.dimension_semantics<parallel>], iteration_bounds = array<i64: 2>, scalar_prefetch = 0 : i64, scratch_operands = 0 : i64, tpu.core_type = #tpu.core_type<tc>, window_params = [{transform_indices = @transform_0, window_bounds = array<i64: 256, 128>}, {pipeline_mode = #tpu.pipeline_mode<synchronous>, transform_indices = @transform_1, window_bounds = array<i64: 128, 128>}, {transform_indices = @transform_2, window_bounds = array<i64: 256, 128>}, {transform_indices = @transform_3, window_bounds = array<i64: 8, 128>}]} {
    %c0 = arith.constant 0 : index
    %c0_0 = arith.constant 0 : index
    %0 = vector.load %arg1[%c0, %c0_0] : memref<256x128xbf16, #tpu.memory_space<vmem>>, vector<256x128xbf16>
    %c0_1 = arith.constant 0 : index
    %c0_2 = arith.constant 0 : index
    %1 = vector.load %arg2[%c0_1, %c0_2] : memref<128x128xbf16, #tpu.memory_space<vmem>>, vector<128x128xbf16>
    %cst = arith.constant dense<0.000000e+00> : vector<256x128xf32>
    %2 = tpu.matmul %0, %1, %cst {dimension_numbers = #tpu.dot_dimension_numbers<[1], [0], [0], [1], [0, 0, 1, 1], [], []>} : vector<256x128xbf16>, vector<128x128xbf16>, vector<256x128xf32> -> vector<256x128xf32>
    %c0_3 = arith.constant 0 : index
    %c0_4 = arith.constant 0 : index
    %3 = vector.load %arg3[%c0_3, %c0_4] : memref<256x128xf32, #tpu.memory_space<vmem>>, vector<256x128xf32>
    tpu.vector_store %arg3[%c0_3, %c0_4], %2 {strides = array<i32>} : memref<256x128xf32, #tpu.memory_space<vmem>>, vector<256x128xf32>,
    %cst_5 = arith.constant 0.000000e+00 : f32
    %4 = vector.broadcast %cst_5 : f32 to vector<8x128xf32>
    %c0_6 = arith.constant 0 : index
    %c0_7 = arith.constant 0 : index
    %5 = vector.load %arg4[%c0_6, %c0_7] : memref<8x128xf32, #tpu.memory_space<vmem>>, vector<8x128xf32>
    tpu.vector_store %arg4[%c0_6, %c0_7], %4 {strides = array<i32>} : memref<8x128xf32, #tpu.memory_space<vmem>>, vector<8x128xf32>,
    %cst_8 = arith.constant dense<0.000000e+00> : vector<128xf32>
    %6 = vector.multi_reduction <add>, %2, %cst_8 [0] : vector<256x128xf32> to vector<128xf32>
    %7 = vector.shape_cast %6 : vector<128xf32> to vector<1x128xf32>
    %c0_9 = arith.constant 0 : index
    %c0_10 = arith.constant 0 : index
    %8 = vector.load %arg4[%c0_9, %c0_10] : memref<8x128xf32, #tpu.memory_space<vmem>>, vector<1x128xf32>
    tpu.vector_store %arg4[%c0_9, %c0_10], %7 {strides = array<i32>} : memref<8x128xf32, #tpu.memory_space<vmem>>, vector<1x128xf32>,
    %9 = arith.mulf %2, %2 : vector<256x128xf32>
    %cst_11 = arith.constant dense<0.000000e+00> : vector<128xf32>
    %10 = vector.multi_reduction <add>, %9, %cst_11 [0] : vector<256x128xf32> to vector<128xf32>
    %11 = vector.shape_cast %10 : vector<128xf32> to vector<1x128xf32>
    %c1 = arith.constant 1 : index
    %c0_12 = arith.constant 0 : index
    %12 = vector.load %arg4[%c1, %c0_12] : memref<8x128xf32, #tpu.memory_space<vmem>>, vector<1x128xf32>
    tpu.vector_store %arg4[%c1, %c0_12], %11 {strides = array<i32>} : memref<8x128xf32, #tpu.memory_space<vmem>>, vector<1x128xf32>,
    return
  }
  func.func @transform_0(%arg0: i32) -> (i32, i32) {
    %c0_i32 = arith.constant 0 : i32
    %c0_i32_0 = arith.constant 0 : i32
    return %arg0, %c0_i32 : i32, i32
  }
  func.func @transform_1(%arg0: i32) -> (i32, i32) {
    %c0_i32 = arith.constant 0 : i32
    %c0_i32_0 = arith.constant 0 : i32
    %c0_i32_1 = arith.constant 0 : i32
    return %c0_i32, %c0_i32_0 : i32, i32
  }
  func.func @transform_2(%arg0: i32) -> (i32, i32) {
    %c0_i32 = arith.constant 0 : i32
    %c0_i32_0 = arith.constant 0 : i32
    return %arg0, %c0_i32 : i32, i32
  }
  func.func @transform_3(%arg0: i32) -> (i32, i32) {
    %c0_i32 = arith.constant 0 : i32
    %c0_i32_0 = arith.constant 0 : i32
    return %arg0, %c0_i32 : i32, i32
  }
}

</mosaic_0001>

<bundles_post_ra>
// kernel: tpu_custom_call.1
= control target key start
LH: loop header
LB: loop body
LE: loop exit
PB: predicated region body
PF: predicated region fallthrough
CT: control target
= control target key end

     0   :  { %9 = vsyncpa [#allocation3], 0  ;;  %s1623_s0 = inlined_call_operand.hbm [shape: bf16[512,128], index: 0, kind: input, shape index: {}]   ;;  %s1624_s1 = inlined_call_operand.hbm [shape: bf16[128,128], index: 1, kind: input, shape index: {}]   ;;  %s1625_s2 = inlined_call_operand.hbm [shape: f32[512,128], index: 2, kind: output, shape index: {0}]   ;;  %s1626_s3 = inlined_call_operand.hbm [shape: f32[16,128], index: 3, kind: output, shape index: {1}]  }
   0x1   :  { %11 = vsyncpa [#allocation3 + $0x1], 0 }
   0x2   :  { %12 = vsyncpa [#allocation6], 0 }
   0x3   :  { %13 = vsyncpa [#allocation4], 0 }
   0x4   :  { %15 = vsyncpa [#allocation4 + $0x1], 0 }
   0x5   :  { %16 = vsyncpa [#allocation9], 0 }
   0x6   :  { %18 = vsyncpa [#allocation9 + $0x1], 0  ;;  %s1266_s12 = smov 0   ;;  %s1268_s13 = smov 0  }
   0x7   :  { %s1270_s14 = smov 0   ;;  %s1272_s15 = smov 0  }
   0x8 LB: > { %s1287_s16 = sadd.s32 4294967295, %s1235_s15   ;;  %s859_s17 = sadd.s32 4294967294, %s1235_s15   ;;  %s1235_s15 = sphi %s1272_s15, %s1648_s15   ;;  %s1231_s14 = sphi %s1270_s14, %s1647_s14   ;;  %s1227_s13 = sphi %s1268_s13, %s1646_s13   ;;  %s1223_s12 = sphi %s1266_s12, %s1645_s12  }
   0x9   : > { %p44_p0 = scmp.ne.s32.totalorder %s1227_s13, %s1223_s12  ;;  %p1627_p1 = scmp.eq.s32.totalorder %s1287_s16, 0 }
   0xa   : > { %p95_p3 = scmp.eq.s32.totalorder %s859_s17, 1  ;;  %p860_p5 = scmp.ge.s32.totalorder %s1235_s15, 1 }
   0xb   : > { %p1296_p4 = por %p1627_p1, %p44_p0  ;;  %p128_p7 = scmp.lt.s32.totalorder %s1235_s15, 3 }
   0xc   : > { %p1301_p6 = por %p95_p3, %p44_p0  ;;  %s1237_s21 = smov [#allocation5]  }
   0xd   : > { %s1631_s18 = scalar_select %p1296_p4, 1, 0 }
   0xe   : > { %s1632_s19 = scalar_select %p1301_p6, 1, 0 }
   0xf   : > { %p1306_p8 = pnand %p860_p5, %p128_p7  ;;  %s140_s22 = sshll.u32 %s1237_s21, 4  ;;  %s141_s22 = int_to_ptr.vmem [resolvable:$true] %s140_s22 }
  0x10   : > { %s1320_s24 = sadd.s32 1, %s1235_s15   ;;  %s31_s25 = sadd.s32 1, %s1231_s14 }
  0x11   : > { %s1633_s20 = scalar_select %p1306_p8, 1, 0 }
  0x12   : > { %p1002_p9 = pneg %p1306_p8  ;;  %s28_s26 = ssub.s32 %s1235_s15, %s1320_s24 }
  0x13   : > { %s1094_s27 = scalar_lea.vmem %s141_s22, 1024  ;;  %p1102_p5 = scmp.lt.s32.totalorder %s141_s22, %s141_s22 }
  0x14   : > { %p1315_p11 = pnand %p1002_p9, %p1627_p1  ;;  %p1095_p13 = scmp.ne.s32.totalorder %s141_s22, %s1094_s27 }
  0x15   : > { %p1103_p7 = scmp.lt.s32.totalorder %s1094_s27, %s1094_s27 }
  0x16   : > { %p1085_p12 = pneg %p1315_p11 }
  0x17   : > { %p1104_p10 = por %p1103_p7, %p1102_p5 }
  0x18   : > { %p1097_p0 = pnand %p1095_p13, %p1085_p12 }
  0x1a   : > { %p1098_p3 = pneg %p1097_p0 }
  0x1c   : > { %p1105_p2 = pnand %p1104_p10, %p1098_p3 }
  0x1e   : > { %1108 = shalt.err (!%p1105_p2)
}
  0x1f   : > { %s1238_s28 = smov 64   ;;  %s1239_s29 = smov 4  }
  0x20   : > { %1005 = dma.hbm_to_vmem [thread:$0]  (!%p1315_p11), %s1624_s1, 1024, %s141_s22, [#allocation6], %s1238_s28, %s1238_s28, %s1239_s29  }
  0x21   : > { %p29_p2 = scmp.eq.s32.totalorder %s28_s26, 0  ;;  %p38_p9 = scmp.ne.s32.totalorder %s1231_s14, %s1227_s13 }
  0x22   : > { %p39_p10 = scmp.eq.s32.totalorder %s1235_s15, 0  ;;  %p1018_p12 = scmp.lt.s32.totalorder %s1235_s15, 2 }
  0x23   : > { %s1340_s5 = scalar_select %p29_p2, %s1231_s14, %s31_s25  }
  0x24   : > { %p40_p13 = por %p39_p10, %p38_p9  ;;  %p1635_p0 = scmp.eq.s32.totalorder %s1287_s16, 1 }
  0x25   : > { %s154_s7 = sand.u32 1, %s1231_s14   ;;  %s902_s8 = sshll.u32 %s1235_s15, 11 }
  0x26   : > { %p1344_p3 = por %p1635_p0, %p38_p9  ;;  %s863_s9 = sshll.u32 %s154_s7, 7 }
  0x27   : > { %s1353_s17 = scalar_lea.hbm %s1623_s0, %s902_s8  ;;  %s158_s21 = scalar_lea.vmem [#allocation2], %s863_s9 }
  0x28   : > { %s1636_s6 = scalar_select %p1344_p3, 1, 0 }
  0x29   : > { %s165_s22 = sshll.u32 %s158_s21, 4  ;;  %p1355_p11 = pnand %p1018_p12, %p40_p13  ;;  %s1359_s22 = int_to_ptr.vmem [resolvable:$true] %s165_s22 }
  0x2a   : > { %s1361_s25 = scalar_lea.sflag [#allocation3], %s154_s7  ;;  %s1109_s26 = scalar_lea.hbm %s1353_s17, 2048 }
  0x2b   : > { %p1110_p5 = scmp.ne.s32.totalorder %s1353_s17, %s1109_s26  ;;  %p1111_p7 = pneg %p1355_p11 }
  0x2c   : > { %s1114_s4 = scalar_lea.hbm %s1623_s0, 4096  ;;  %p1115_p10 = scmp.lt.s32.totalorder %s1353_s17, %s1623_s0 }
  0x2d   : > { %p1112_p2 = pnand %p1111_p7, %p1110_p5  ;;  %p1116_p12 = scmp.lt.s32.totalorder %s1114_s4, %s1109_s26 }
  0x2f   : > { %p1113_p9 = pneg %p1112_p2  ;;  %p1117_p13 = por %p1116_p12, %p1115_p10 }
  0x31   : > { %p1118_p0 = pnand %p1117_p13, %p1113_p9 }
  0x33   : > { %1121 = shalt.err (!%p1118_p0)
}
  0x34   : > { %s1122_s7 = scalar_lea.vmem %s1359_s22, 2048  ;;  %s1240_s10 = smov [#allocation2]  }
  0x35   : > { %p1123_p1 = scmp.ne.s32.totalorder %s1359_s22, %s1122_s7  ;;  %s1127_s11 = sshll.u32 %s1240_s10, 4  ;;  %s1128_s11 = int_to_ptr.vmem [resolvable:$false] %s1127_s11 }
  0x36   : > { %s1129_s21 = scalar_lea.vmem %s1128_s11, 4096  ;;  %p1130_p2 = scmp.lt.s32.totalorder %s1359_s22, %s1128_s11 }
  0x37   : > { %p1125_p6 = pnand %p1123_p1, %p1111_p7  ;;  %p1131_p3 = scmp.lt.s32.totalorder %s1129_s21, %s1122_s7 }
  0x39   : > { %p1126_p5 = pneg %p1125_p6  ;;  %p1132_p4 = por %p1131_p3, %p1130_p2 }
  0x3b   : > { %p1133_p8 = pnand %p1132_p4, %p1126_p5 }
  0x3d   : > { %1136 = shalt.err (!%p1133_p8)
}
  0x3e   : > { %1009 = dma.hbm_to_vmem [thread:$0]  (!%p1355_p11), %s1353_s17, 2048, %s1359_s22, %s1361_s25, %s1238_s28, %s1238_s28, %s1239_s29  }
  0x3f   : > { %p1638_p1 = scmp.ne.s32.totalorder %s1633_s20, 0 }
  0x40   : > { %s1388_s26 = sand.u32 (!%p1638_p1), 1, %s1227_s13   ;;  %p1639_p4 = scmp.ne.s32.totalorder (!%p1638_p1), %s1631_s18, 0 }
  0x41   : > { %177 = sbr.rel (%p1638_p1) target bundleno = 405 (0x195), region = 28  ;;  %s867_s27 = sshll.u32 (!%p1638_p1), %s1388_s26, 7 }
  0x42   : > { %s180_s30 = scalar_lea.sflag (!%p1638_p1), [#allocation3], %s1388_s26  ;;  %s1392_s4 = scalar_lea.vmem (!%p1638_p1), [#allocation2], %s867_s27 }
  0x46   : > { %1206 = dma.done.wait (%p1639_p4), %s180_s30, 2048  }
  0x47   : > { %1208 = vsyncadd (%p1639_p4), %s180_s30, 4294965248  ;;  %p1640_p6 = scmp.eq.s32.totalorder %s1287_s16, 0 }
  0x49   : > { %1210 = dma.done.wait (%p1640_p6), [#allocation6], 1024   ;;  %p1641_p8 = pmov %p1640_p6 }
  0x4a   : > { %v1059_v0 = vld [vmem:[#allocation5 + $0x38] sm:$0xff]   ;;  %v1060_v1 = vld [vmem:[#allocation5 + $0x30] sm:$0xff]   ;;  %v1061_v2 = vld [vmem:[#allocation5 + $0x28] sm:$0xff]   ;;  %s870_s18 = sshll.u32 %s1388_s26, 3  ;;  %v1241_v24 = vmov 0.0   ;;  %s869_s28 = sshll.u32 %s1388_s26, 8 }
  0x4b   : > { %1212 = vsyncadd (%p1641_p8), [#allocation6], 4294966272  ;;  %928 = vmatprep.subr.bf16.mxu0 %v1059_v0  ;;  %976 = vmatprep.subr.bf16.mxu1 %v1059_v0  ;;  %v1062_v3 = vld [vmem:[#allocation5 + $0x20] sm:$0xff]   ;;  %v1063_v5 = vld [vmem:[#allocation5 + $0x18] sm:$0xff]   ;;  %s1419_s20 = scalar_lea.vmem [#allocation8], %s870_s18  ;;  %s1425_s29 = scalar_lea.vmem [#allocation7], %s869_s28 }
  0x4c   : > { %929 = vmatpush3.bf16.msra.mxu0 %v1059_v0  ;;  %984 = vmatpush3.bf16.msra.mxu1 %v1059_v0  ;;  %v1067_v4 = vld [vmem:[%s1392_s4] sm:$0xff]   ;;  %v1064_v6 = vld [vmem:[#allocation5 + $0x10] sm:$0xff]   ;;  %v1065_v8 = vld [vmem:[#allocation5 + $0x8] sm:$0xff]   ;;  %603 = vst [vmem:[%s1419_s20] sm:$0xff] %v1241_v24  ;;  %s903_s17 = sshll.u32 %s1287_s16, 12  ;;  %s731_s22 = sshll.u32 %s1425_s29, 4  ;;  %s1504_s22 = int_to_ptr.vmem [resolvable:$true] %s731_s22 }
  0x4d   : > { %930 = vmatprep.subr.bf16.mxu0 %v1060_v1  ;;  %977 = vmatprep.subr.bf16.mxu1 %v1060_v1  ;;  %v1075_v7 = vld [vmem:[%s1392_s4 + $0x40] sm:$0xff]   ;;  %v1068_v10 = vld [vmem:[%s1392_s4 + $0x8] sm:$0xff]   ;;  %v1069_v12 = vld [vmem:[%s1392_s4 + $0x10] sm:$0xff]   ;;  %s1502_s8 = scalar_lea.hbm %s1625_s2, %s903_s17  ;;  %s713_s9 = scalar_lea.sflag [#allocation4], %s1388_s26 }
  0x4e   : > { %944 = vmatprep.mubr.bf16.mxu0 %v1067_v4  ;;  %960 = vmatprep.mubr.bf16.mxu1 %v1075_v7  ;;  %v1066_v9 = vld [vmem:[#allocation5] sm:$0xff]   ;;  %v1076_v11 = vld [vmem:[%s1392_s4 + $0x48] sm:$0xff]   ;;  %v1077_v13 = vld [vmem:[%s1392_s4 + $0x50] sm:$0xff]   ;;  %s1137_s7 = scalar_lea.vmem %s1504_s22, 4096  ;;  %p1642_p11 = scmp.ne.s32.totalorder %s1636_s6, 0 }
  0x4f   : > { %v1070_v14 = vld [vmem:[%s1392_s4 + $0x18] sm:$0xff]   ;;  %v1071_v16 = vld [vmem:[%s1392_s4 + $0x20] sm:$0xff]   ;;  %v1072_v18 = vld [vmem:[%s1392_s4 + $0x28] sm:$0xff]   ;;  %p1138_p3 = scmp.ne.s32.totalorder %s1504_s22, %s1137_s7  ;;  %s1242_s10 = smov [#allocation7]  }
  0x50   : > { %931 = vmatpush3.bf16.msra.mxu0 %v1060_v1  ;;  %985 = vmatpush3.bf16.msra.mxu1 %v1060_v1  ;;  %v1078_v15 = vld [vmem:[%s1392_s4 + $0x58] sm:$0xff]   ;;  %v1079_v17 = vld [vmem:[%s1392_s4 + $0x60] sm:$0xff]   ;;  %v1080_v19 = vld [vmem:[%s1392_s4 + $0x68] sm:$0xff]   ;;  %s1141_s11 = sshll.u32 %s1242_s10, 4  ;;  %s1142_s11 = int_to_ptr.vmem [resolvable:$false] %s1141_s11 }
  0x51   : > { %932 = vmatprep.subr.bf16.mxu0 %v1061_v2  ;;  %978 = vmatprep.subr.bf16.mxu1 %v1061_v2  ;;  %v1073_v20 = vld [vmem:[%s1392_s4 + $0x30] sm:$0xff]   ;;  %v1074_v22 = vld [vmem:[%s1392_s4 + $0x38] sm:$0xff]   ;;  %p1139_p7 = pnand %p1138_p3, %p1642_p11  ;;  %s1143_s21 = scalar_lea.vmem %s1142_s11, 8192 }
  0x52   : > { %v1081_v21 = vld [vmem:[%s1392_s4 + $0x70] sm:$0xff]   ;;  %v1082_v23 = vld [vmem:[%s1392_s4 + $0x78] sm:$0xff]   ;;  %p1144_p10 = scmp.lt.s32.totalorder %s1504_s22, %s1142_s11  ;;  %p1145_p12 = scmp.lt.s32.totalorder %s1143_s21, %s1137_s7 }
  0x53   : > { %p1140_p9 = pneg %p1139_p7 }
  0x54   : > { %933 = vmatpush3.bf16.msra.mxu0 %v1061_v2  ;;  %986 = vmatpush3.bf16.msra.mxu1 %v1061_v2  ;;  %p1146_p13 = por %p1145_p12, %p1144_p10 }
  0x55   : > { %934 = vmatprep.subr.bf16.mxu0 %v1062_v3  ;;  %979 = vmatprep.subr.bf16.mxu1 %v1062_v3 }
  0x56   : > { %p1147_p0 = pnand %p1146_p13, %p1140_p9 }
  0x58   : > { %935 = vmatpush3.bf16.msra.mxu0 %v1062_v3  ;;  %987 = vmatpush3.bf16.msra.mxu1 %v1062_v3 }
  0x59   : > { %936 = vmatprep.subr.bf16.mxu0 %v1063_v5  ;;  %980 = vmatprep.subr.bf16.mxu1 %v1063_v5 }
  0x5c   : > { %937 = vmatpush3.bf16.msra.mxu0 %v1063_v5  ;;  %988 = vmatpush3.bf16.msra.mxu1 %v1063_v5 }
  0x5d   : > { %938 = vmatprep.subr.bf16.mxu0 %v1064_v6  ;;  %981 = vmatprep.subr.bf16.mxu1 %v1064_v6 }
  0x60   : > { %939 = vmatpush3.bf16.msra.mxu0 %v1064_v6  ;;  %989 = vmatpush3.bf16.msra.mxu1 %v1064_v6 }
  0x61   : > { %940 = vmatprep.subr.bf16.mxu0 %v1065_v8  ;;  %982 = vmatprep.subr.bf16.mxu1 %v1065_v8 }
  0x64   : > { %941 = vmatpush3.bf16.msra.mxu0 %v1065_v8  ;;  %990 = vmatpush3.bf16.msra.mxu1 %v1065_v8 }
  0x65   : > { %942 = vmatprep.subr.bf16.mxu0 %v1066_v9  ;;  %983 = vmatprep.subr.bf16.mxu1 %v1066_v9 }
  0x68   : > { %943 = vmatpush3.bf16.msra.mxu0 %v1066_v9  ;;  %991 = vmatpush3.bf16.msra.mxu1 %v1066_v9 }
  0x6b   : > { %945 = vmatmul.mubr.bf16.vlgmr.msra.gmra.mxu0 %v1068_v10  ;;  %961 = vmatmul.mubr.bf16.vlgmr.msra.gmra.mxu1 %v1076_v11 }
  0x6c   : > { %948 = vmatprep.mubr.bf16.mxu0 %v1069_v12  ;;  %964 = vmatprep.mubr.bf16.mxu1 %v1077_v13 }
  0x73   : > { %949 = vmatmul.mubr.bf16.gmra.mxu0 %v1070_v14  ;;  %965 = vmatmul.mubr.bf16.gmra.mxu1 %v1078_v15 }
  0x74   : > { %952 = vmatprep.mubr.bf16.mxu0 %v1071_v16  ;;  %968 = vmatprep.mubr.bf16.mxu1 %v1079_v17 }
  0x7b   : > { %953 = vmatmul.mubr.bf16.gmra.mxu0 %v1072_v18  ;;  %969 = vmatmul.mubr.bf16.gmra.mxu1 %v1080_v19 }
  0x7c   : > { %956 = vmatprep.mubr.bf16.mxu0 %v1073_v20  ;;  %972 = vmatprep.mubr.bf16.mxu1 %v1081_v21 }
  0x83   : > { %957 = vmatmul.mubr.bf16.gmra.mxu0 %v1074_v22  ;;  %973 = vmatmul.mubr.bf16.gmra.mxu1 %v1082_v23 }
 0x12b   : > { %v946_v25 = vpop.f32.mrf.mxu0  ;;  %v1423_v26 = vpop.f32.mrf.mxu1 }
 0x12c   : > { %573 = vst [vmem:[%s1425_s29 + $0x10] sm:$0xff] %v946_v25  ;;  %589 = vst [vmem:[%s1425_s29 + $0x90] sm:$0xff] %v1423_v26  ;;  %v644_v38 = vmul.f32 %v946_v25, %v946_v25 }
 0x12d   : > { %v444_v27 = vpop.f32.mrf.mxu0  ;;  %v1430_v28 = vpop.f32.mrf.mxu1 }
 0x12e   : > { %571 = vst [vmem:[%s1425_s29] sm:$0xff] %v444_v27  ;;  %587 = vst [vmem:[%s1425_s29 + $0x80] sm:$0xff] %v1430_v28  ;;  %v642_v33 = vmul.f32 %v444_v27, %v444_v27 }
 0x12f   : > { %v947_v29 = vpop.f32.mrf.mxu0  ;;  %v1435_v30 = vpop.f32.mrf.mxu1 }
 0x130   : > { %574 = vst [vmem:[%s1425_s29 + $0x18] sm:$0xff] %v947_v29  ;;  %590 = vst [vmem:[%s1425_s29 + $0x98] sm:$0xff] %v1435_v30  ;;  %v645_v43 = vmul.f32 %v947_v29, %v947_v29 }
 0x131   : > { %v447_v31 = vpop.f32.mrf.mxu0  ;;  %v1440_v32 = vpop.f32.mrf.mxu1 }
 0x132   : > { %572 = vst [vmem:[%s1425_s29 + $0x8] sm:$0xff] %v447_v31  ;;  %v604_v34 = vadd.f32 %v447_v31, %v444_v27  ;;  %v643_v35 = vmul.f32 %v447_v31, %v447_v31  ;;  %588 = vst [vmem:[%s1425_s29 + $0x88] sm:$0xff] %v1440_v32 }
 0x133   : > { %v950_v36 = vpop.f32.mrf.mxu0  ;;  %v1445_v37 = vpop.f32.mrf.mxu1 }
 0x134   : > { %v605_v39 = vadd.f32 %v946_v25, %v604_v34  ;;  %v674_v40 = vadd.f32 %v643_v35, %v642_v33  ;;  %577 = vst [vmem:[%s1425_s29 + $0x30] sm:$0xff] %v950_v36  ;;  %593 = vst [vmem:[%s1425_s29 + $0xb0] sm:$0xff] %v1445_v37  ;;  %v648_v58 = vmul.f32 %v950_v36, %v950_v36 }
 0x135   : > { %v460_v41 = vpop.f32.mrf.mxu0  ;;  %v1450_v42 = vpop.f32.mrf.mxu1 }
 0x136   : > { %v675_v44 = vadd.f32 %v674_v40, %v644_v38  ;;  %575 = vst [vmem:[%s1425_s29 + $0x20] sm:$0xff] %v460_v41  ;;  %v606_v45 = vadd.f32 %v947_v29, %v605_v39  ;;  %591 = vst [vmem:[%s1425_s29 + $0xa0] sm:$0xff] %v1450_v42  ;;  %v646_v49 = vmul.f32 %v460_v41, %v460_v41 }
 0x137   : > { %v951_v46 = vpop.f32.mrf.mxu0  ;;  %v1455_v47 = vpop.f32.mrf.mxu1 }
 0x138   : > { %v607_v48 = vadd.f32 %v606_v45, %v460_v41  ;;  %v676_v50 = vadd.f32 %v675_v44, %v645_v43  ;;  %578 = vst [vmem:[%s1425_s29 + $0x38] sm:$0xff] %v951_v46  ;;  %594 = vst [vmem:[%s1425_s29 + $0xb8] sm:$0xff] %v1455_v47  ;;  %v649_v63 = vmul.f32 %v951_v46, %v951_v46 }
 0x139   : > { %v463_v51 = vpop.f32.mrf.mxu0  ;;  %v1460_v52 = vpop.f32.mrf.mxu1 }
 0x13a   : > { %v677_v53 = vadd.f32 %v676_v50, %v646_v49  ;;  %576 = vst [vmem:[%s1425_s29 + $0x28] sm:$0xff] %v463_v51  ;;  %v608_v54 = vadd.f32 %v607_v48, %v463_v51  ;;  %v647_v55 = vmul.f32 %v463_v51, %v463_v51  ;;  %592 = vst [vmem:[%s1425_s29 + $0xa8] sm:$0xff] %v1460_v52 }
 0x13b   : > { %v954_v56 = vpop.f32.mrf.mxu0  ;;  %v1465_v57 = vpop.f32.mrf.mxu1 }
 0x13c   : > { %v609_v59 = vadd.f32 %v950_v36, %v608_v54  ;;  %v678_v60 = vadd.f32 %v677_v53, %v647_v55  ;;  %581 = vst [vmem:[%s1425_s29 + $0x50] sm:$0xff] %v954_v56  ;;  %597 = vst [vmem:[%s1425_s29 + $0xd0] sm:$0xff] %v1465_v57  ;;  %v652_v14 = vmul.f32 %v954_v56, %v954_v56 }
 0x13d   : > { %v476_v61 = vpop.f32.mrf.mxu0  ;;  %v1470_v62 = vpop.f32.mrf.mxu1 }
 0x13e   : > { %v679_v0 = vadd.f32 %v678_v60, %v648_v58  ;;  %579 = vst [vmem:[%s1425_s29 + $0x40] sm:$0xff] %v476_v61  ;;  %v610_v1 = vadd.f32 %v951_v46, %v609_v59  ;;  %595 = vst [vmem:[%s1425_s29 + $0xc0] sm:$0xff] %v1470_v62  ;;  %v650_v5 = vmul.f32 %v476_v61, %v476_v61 }
 0x13f   : > { %v955_v2 = vpop.f32.mrf.mxu0  ;;  %v1475_v3 = vpop.f32.mrf.mxu1 }
 0x140   : > { %v611_v4 = vadd.f32 %v610_v1, %v476_v61  ;;  %v680_v6 = vadd.f32 %v679_v0, %v649_v63  ;;  %582 = vst [vmem:[%s1425_s29 + $0x58] sm:$0xff] %v955_v2  ;;  %598 = vst [vmem:[%s1425_s29 + $0xd8] sm:$0xff] %v1475_v3  ;;  %v653_v19 = vmul.f32 %v955_v2, %v955_v2 }
 0x141   : > { %v479_v7 = vpop.f32.mrf.mxu0  ;;  %v1480_v8 = vpop.f32.mrf.mxu1 }
 0x142   : > { %v681_v9 = vadd.f32 %v680_v6, %v650_v5  ;;  %580 = vst [vmem:[%s1425_s29 + $0x48] sm:$0xff] %v479_v7  ;;  %v612_v10 = vadd.f32 %v611_v4, %v479_v7  ;;  %v651_v11 = vmul.f32 %v479_v7, %v479_v7  ;;  %596 = vst [vmem:[%s1425_s29 + $0xc8] sm:$0xff] %v1480_v8 }
 0x143   : > { %v958_v12 = vpop.f32.mrf.mxu0  ;;  %v1485_v13 = vpop.f32.mrf.mxu1 }
 0x144   : > { %v613_v15 = vadd.f32 %v954_v56, %v612_v10  ;;  %v682_v16 = vadd.f32 %v681_v9, %v651_v11  ;;  %585 = vst [vmem:[%s1425_s29 + $0x70] sm:$0xff] %v958_v12  ;;  %601 = vst [vmem:[%s1425_s29 + $0xf0] sm:$0xff] %v1485_v13 }
 0x145   : > { %v492_v17 = vpop.f32.mrf.mxu0  ;;  %v1492_v18 = vpop.f32.mrf.mxu1 }
 0x146   : > { %v683_v20 = vadd.f32 %v682_v16, %v652_v14  ;;  %583 = vst [vmem:[%s1425_s29 + $0x60] sm:$0xff] %v492_v17  ;;  %v614_v21 = vadd.f32 %v955_v2, %v613_v15  ;;  %599 = vst [vmem:[%s1425_s29 + $0xe0] sm:$0xff] %v1492_v18  ;;  %v654_v25 = vmul.f32 %v492_v17, %v492_v17 }
 0x147   : > { %v959_v22 = vpop.f32.mrf.mxu0  ;;  %v1497_v23 = vpop.f32.mrf.mxu1 }
 0x148   : > { %v615_v24 = vadd.f32 %v614_v21, %v492_v17  ;;  %v684_v27 = vadd.f32 %v683_v20, %v653_v19  ;;  %586 = vst [vmem:[%s1425_s29 + $0x78] sm:$0xff] %v959_v22  ;;  %602 = vst [vmem:[%s1425_s29 + $0xf8] sm:$0xff] %v1497_v23 }
 0x149   : > { %v495_v29 = vpop.f32.mrf.mxu0  ;;  %v1509_v31 = vpop.f32.mrf.mxu1 }
 0x14a   : > { %v685_v33 = vadd.f32 %v684_v27, %v654_v25  ;;  %584 = vst [vmem:[%s1425_s29 + $0x68] sm:$0xff] %v495_v29  ;;  %v616_v34 = vadd.f32 %v615_v24, %v495_v29  ;;  %v655_v35 = vmul.f32 %v495_v29, %v495_v29  ;;  %600 = vst [vmem:[%s1425_s29 + $0xe8] sm:$0xff] %v1509_v31 }
 0x14b   : > { %1150 = shalt.err (!%p1147_p0)
}
 0x14c   : > { %s1151_s27 = scalar_lea.hbm %s1502_s8, 4096  ;;  %s1155_s18 = scalar_lea.hbm %s1625_s2, 8192 }
 0x14d   : > { %p1152_p5 = scmp.ne.s32.totalorder %s1502_s8, %s1151_s27  ;;  %p1156_p4 = scmp.lt.s32.totalorder %s1502_s8, %s1625_s2 }
 0x14e   : > { %p1157_p6 = scmp.lt.s32.totalorder %s1155_s18, %s1151_s27 }
 0x14f   : > { %p1153_p2 = pnand %p1152_p5, %p1642_p11 }
 0x150   : > { %p1158_p8 = por %p1157_p6, %p1156_p4 }
 0x151   : > { %p1154_p1 = pneg %p1153_p2 }
 0x153   : > { %p1159_p3 = pnand %p1158_p8, %p1154_p1 }
 0x155   : > { %1162 = shalt.err (!%p1159_p3)
}
 0x156   : > { %s1243_s17 = smov 128   ;;  %s1244_s23 = smov 8   ;;  %v656_v36 = vmul.f32 %v958_v12, %v958_v12  ;;  %v617_v38 = vadd.f32 %v958_v12, %v616_v34  ;;  %v686_v39 = vadd.f32 %v685_v33, %v655_v35  ;;  %v657_v40 = vmul.f32 %v959_v22, %v959_v22 }
 0x157   : > { %998 = dma.vmem_to_hbm [thread:$0]  (%p1642_p11), %s1504_s22, 4096, %s1502_s8, %s713_s9, %s1243_s17, %s1243_s17, %s1244_s23   ;;  %v658_v44 = vmul.f32 %v1430_v28, %v1430_v28  ;;  %v659_v49 = vmul.f32 %v1440_v32, %v1440_v32  ;;  %v660_v51 = vmul.f32 %v1423_v26, %v1423_v26  ;;  %v661_v55 = vmul.f32 %v1435_v30, %v1435_v30 }
 0x158   : > { %v618_v41 = vadd.f32 %v959_v22, %v617_v38  ;;  %v687_v43 = vadd.f32 %v686_v39, %v656_v36  ;;  %v662_v59 = vmul.f32 %v1450_v42, %v1450_v42  ;;  %v663_v63 = vmul.f32 %v1460_v52, %v1460_v52  ;;  %s899_s22 = sshll.u32 %s1287_s16, 7  ;;  %s747_s25 = sshll.u32 %s1419_s20, 4  ;;  %s748_s25 = int_to_ptr.vmem [resolvable:$true] %s747_s25 }
 0x159   : > { %v666_v5 = vmul.f32 %v1470_v62, %v1470_v62  ;;  %v667_v9 = vmul.f32 %v1480_v8, %v1480_v8  ;;  %v670_v15 = vmul.f32 %v1492_v18, %v1492_v18  ;;  %v671_v19 = vmul.f32 %v1509_v31, %v1509_v31  ;;  %s745_s7 = scalar_lea.hbm %s1626_s3, %s899_s22  ;;  %s718_s10 = scalar_lea.sflag [#allocation9], %s1388_s26 }
 0x15a   : > { %v688_v45 = vadd.f32 %v687_v43, %v657_v40  ;;  %v619_v46 = vadd.f32 %v618_v41, %v1430_v28  ;;  %v673_v21 = vmul.f32 %v1497_v23, %v1497_v23  ;;  %s1163_s11 = scalar_lea.vmem %s748_s25, 128  ;;  %s1245_s21 = smov [#allocation8]  }
 0x15b   : > { %p1164_p7 = scmp.ne.s32.totalorder %s748_s25, %s1163_s11  ;;  %s1167_s27 = sshll.u32 %s1245_s21, 4  ;;  %s1168_s27 = int_to_ptr.vmem [resolvable:$false] %s1167_s27 }
 0x15c   : > { %v620_v48 = vadd.f32 %v619_v46, %v1440_v32  ;;  %v689_v50 = vadd.f32 %v688_v45, %v658_v44  ;;  %s1169_s16 = scalar_lea.vmem %s1168_s27, 256  ;;  %p1170_p12 = scmp.lt.s32.totalorder %s748_s25, %s1168_s27 }
 0x15d   : > { %p1165_p9 = pnand %p1164_p7, %p1642_p11  ;;  %p1171_p13 = scmp.lt.s32.totalorder %s1169_s16, %s1163_s11 }
 0x15e   : > { %v621_v53 = vadd.f32 %v1423_v26, %v620_v48  ;;  %v690_v54 = vadd.f32 %v689_v50, %v659_v49  ;;  %v664_v26 = vmul.f32 %v1445_v37, %v1445_v37 }
 0x15f   : > { %p1166_p10 = pneg %p1165_p9  ;;  %p1172_p0 = por %p1171_p13, %p1170_p12 }
 0x160   : > { %v691_v56 = vadd.f32 %v690_v54, %v660_v51  ;;  %v622_v58 = vadd.f32 %v1435_v30, %v621_v53  ;;  %v665_v30 = vmul.f32 %v1455_v47, %v1455_v47 }
 0x161   : > { %p1173_p5 = pnand %p1172_p0, %p1166_p10 }
 0x162   : > { %v623_v28 = vadd.f32 %v622_v58, %v1450_v42  ;;  %v692_v60 = vadd.f32 %v691_v56, %v661_v55 }
 0x164   : > { %v693_v32 = vadd.f32 %v692_v60, %v662_v59  ;;  %v624_v61 = vadd.f32 %v623_v28, %v1460_v52 }
 0x166   : > { %v625_v0 = vadd.f32 %v1445_v37, %v624_v61  ;;  %v694_v1 = vadd.f32 %v693_v32, %v663_v63  ;;  %v668_v37 = vmul.f32 %v1465_v57, %v1465_v57 }
 0x168   : > { %v695_v2 = vadd.f32 %v694_v1, %v664_v26  ;;  %v626_v4 = vadd.f32 %v1455_v47, %v625_v0  ;;  %v669_v47 = vmul.f32 %v1475_v3, %v1475_v3 }
 0x16a   : > { %v627_v42 = vadd.f32 %v626_v4, %v1470_v62  ;;  %v696_v6 = vadd.f32 %v695_v2, %v665_v30 }
 0x16c   : > { %v697_v7 = vadd.f32 %v696_v6, %v666_v5  ;;  %v628_v52 = vadd.f32 %v627_v42, %v1480_v8 }
 0x16e   : > { %v629_v10 = vadd.f32 %v1465_v57, %v628_v52  ;;  %v698_v11 = vadd.f32 %v697_v7, %v667_v9  ;;  %v672_v57 = vmul.f32 %v1485_v13, %v1485_v13 }
 0x170   : > { %v699_v12 = vadd.f32 %v698_v11, %v668_v37  ;;  %v630_v14 = vadd.f32 %v1475_v3, %v629_v10 }
 0x172   : > { %v631_v62 = vadd.f32 %v630_v14, %v1492_v18  ;;  %v700_v16 = vadd.f32 %v699_v12, %v669_v47 }
 0x174   : > { %v701_v17 = vadd.f32 %v700_v16, %v670_v15  ;;  %v632_v8 = vadd.f32 %v631_v62, %v1509_v31 }
 0x176   : > { %v633_v20 = vadd.f32 %v1485_v13, %v632_v8  ;;  %v702_v3 = vadd.f32 %v701_v17, %v671_v19 }
 0x178   : > { %v634_v18 = vadd.f32 %v1497_v23, %v633_v20  ;;  %v703_v22 = vadd.f32 %v702_v3, %v672_v57 }
 0x17a   : > { %v635_v24 = vrot.slane %v634_v18, 4  ;;  %v704_v25 = vadd.f32 %v703_v22, %v673_v21 }
 0x17c   : > { %v636_v27 = vadd.f32 %v635_v24, %v634_v18  ;;  %v705_v29 = vrot.slane %v704_v25, 4 }
 0x17e   : > { %v637_v31 = vrot.slane %v636_v27, 2  ;;  %v706_v33 = vadd.f32 %v705_v29, %v704_v25 }
 0x180   : > { %v638_v34 = vadd.f32 %v637_v31, %v636_v27  ;;  %v707_v13 = vrot.slane %v706_v33, 2 }
 0x182   : > { %v639_v35 = vrot.slane %v638_v34, 1  ;;  %v708_v36 = vadd.f32 %v707_v13, %v706_v33 }
 0x184   : > { %v640_v38 = vadd.f32 %v639_v35, %v638_v34  ;;  %v709_v39 = vrot.slane %v708_v36, 1 }
 0x186   : > { %v710_v23 = vadd.f32 %v709_v39, %v708_v36  ;;  %641 = vst [vmem:[%s1419_s20] sm:$0x1] %v640_v38 }
 0x188   : > { %711 = vst [vmem:[%s1419_s20 + $0x1] sm:$0x1] %v710_v23 }
 0x189   : > { %1176 = shalt.err (!%p1173_p5)
}
 0x18a   : > { %s1177_s30 = scalar_lea.hbm %s745_s7, 128  ;;  %s1181_s4 = scalar_lea.hbm %s1626_s3, 256 }
 0x18b   : > { %p1178_p2 = scmp.ne.s32.totalorder %s745_s7, %s1177_s30  ;;  %p1182_p6 = scmp.lt.s32.totalorder %s745_s7, %s1626_s3 }
 0x18c   : > { %p1183_p8 = scmp.lt.s32.totalorder %s1181_s4, %s1177_s30 }
 0x18d   : > { %p1179_p1 = pnand %p1178_p2, %p1642_p11 }
 0x18e   : > { %p1184_p3 = por %p1183_p8, %p1182_p6 }
 0x18f   : > { %p1180_p4 = pneg %p1179_p1 }
 0x191   : > { %p1185_p7 = pnand %p1184_p3, %p1180_p4 }
 0x193   : > { %1188 = shalt.err (!%p1185_p7)
}
 0x194   : > { %999 = dma.vmem_to_hbm [thread:$0]  (%p1642_p11), %s748_s25, 128, %s745_s7, %s718_s10  }
 0x195 PF: > { %s759_s29 = sand.u32 1, %s1223_s12   ;;  %p1643_p9 = scmp.ne.s32.totalorder %s1632_s19, 0 }
 0x196   : > { %p1644_p10 = scmp.ge.s32.totalorder %s1235_s15, 2  ;;  %s760_s17 = scalar_lea.sflag [#allocation4], %s759_s29 }
 0x198   : > { %p1011_p12 = pnand %p1644_p10, %p1643_p9 }
 0x19a   : > { %p1012_p13 = pneg %p1011_p12 }
 0x19c   : > { %1214 = dma.done.wait (%p1012_p13), %s760_s17, 4096  }
 0x19d   : > { %1216 = vsyncadd (%p1012_p13), %s760_s17, 4294963200  ;;  %s769_s23 = scalar_lea.sflag [#allocation9], %s759_s29 }
 0x19e   : > { %1218 = dma.done.wait (%p1012_p13), %s769_s23, 128  }
 0x19f   : > { %1220 = vsyncadd (%p1012_p13), %s769_s23, 4294967168  ;;  %p21_p11 = scmp.ge.s32.totalorder %s1320_s24, 4   ;;  %s1645_s12 = smov %s1227_s13 }
 0x1a0   : > { %s1646_s13 = smov %s1231_s14  ;;  %s1647_s14 = smov %s1340_s5 }
 0x1a1   : > { %s1648_s15 = smov %s1320_s24  ;;  %23 = sbr.rel (!%p21_p11) target bundleno = 8 (0x8), region = 94 }
 0x1a6   :  { %774 = vsyncpa [#allocation3], 1 }
 0x1a7   :  { %776 = vsyncpa [#allocation3 + $0x1], 1 }
 0x1a8   :  { %777 = vsyncpa [#allocation6], 1 }
 0x1a9   :  { %778 = vsyncpa [#allocation4], 1 }
 0x1aa   :  { %780 = vsyncpa [#allocation4 + $0x1], 1 }
 0x1ab   :  { %781 = vsyncpa [#allocation9], 1 }
 0x1ac   :  { %783 = vsyncpa [#allocation9 + $0x1], 1 }

</bundles_post_ra>
